<compile_context>
chip_gen: v7x
topology: tpu7x:2x2x1
jax: 0.10.0
libtpu: 0.0.40
codegen_flags: <defaults>
</compile_context>

<pallas_src>
import math

import jax
import jax.numpy as jnp
from jax.experimental import pallas as pl
from jax.experimental.pallas import tpu as pltpu


# ----------------------------- configuration ---------------------------------
W = 32              # net_cfg.nerf.W
D = 2               # net_cfg.nerf.D        (number of xyz linears)
V_D = 1             # net_cfg.nerf.V_D      (number of dir linears)
INPUT_XYZ_CH = 32   # net_cfg.input_xyz_ch
INPUT_DIR_CH = 16   # net_cfg.input_dir_ch

G = 4                       # points packed per vreg row (4 * 32 = 128 lanes)
DIR_HALF = W // 2           # 16
DIR_LANES = G * DIR_HALF    # 64 lanes of dir-hidden state in the combo output
OUT_LANES = G * 4           # 16 lanes of packed [r,g,b,alpha] output


def _choose_tile_rows(rows):
    """Tile size in PACKED rows (1 row = 4 points).  Prefer the largest tile
    (cap 2048 rows = 8192 points, a few MiB of VMEM) that still leaves >= 8
    grid steps so both v7x TensorCores get work on the 'parallel' axis and
    each core pipelines DMA against compute; fall back to >= 2 steps, then a
    single full-extent block for tiny inputs."""
    for tm in (2048, 1024, 512, 256, 128, 64):
        if rows >= 8 * tm:
            return tm
    for tm in (2048, 1024, 512, 256, 128, 64):
        if rows >= 2 * tm:
            return tm
    return rows  # single block equal to the full array dim (always legal)


# ------------------------------- kernel --------------------------------------
def nerf_kernel(pts_ref, dir_ref,
                xyz_w0, xyz_b0, xyz_w1, xyz_b1,
                combo_w, combo_b,           # [folded feat->dir | alpha] head
                dir_wd,                     # viewdir half of the dir linear
                rgb_w, rgb_b,
                out_ref):
    f32 = jnp.float32
    bf16 = jnp.bfloat16

    # ---- xyz MLP: D relu-linears, block-diagonal over the 4 packed points ----
    x = pts_ref[...].astype(bf16)                                   # (R, 128)
    x = jnp.dot(x, xyz_w0[...], preferred_element_type=f32) + xyz_b0[...]
    x = jnp.maximum(x, 0.0)
    x = jnp.dot(x.astype(bf16), xyz_w1[...],
                preferred_element_type=f32) + xyz_b1[...]
    x = jnp.maximum(x, 0.0).astype(bf16)

    # ---- fused head: one matmul.  cols [0:64]  = feature@dir_wf + folded bias
    #                                cols [64:80] = rawalpha at its final lane 4g+3
    combo = jnp.dot(x, combo_w[...], preferred_element_type=f32) + combo_b[...]

    # ---- dir MLP (concat eliminated): add the viewdir partial product --------
    h = combo[:, :DIR_LANES] + jnp.dot(dir_ref[...].astype(bf16), dir_wd[...],
                                       preferred_element_type=f32)
    h = jnp.maximum(h, 0.0).astype(bf16)                            # (R, 64)

    # ---- rgb head + sigmoid; weight already routes group g to lanes 4g..4g+2 -
    rgb = jax.nn.sigmoid(jnp.dot(h, rgb_w[...],
                                 preferred_element_type=f32) + rgb_b[...])

    # ---- packed [r,g,b,alpha] x 4 output: lane select, no concatenate --------
    lane = jax.lax.broadcasted_iota(jnp.int32, rgb.shape, dimension=1)
    out_ref[...] = jnp.where((lane & 3) == 3, combo[:, DIR_LANES:], rgb
                             ).astype(out_ref.dtype)


# ------------------------------ weight packing --------------------------------
def pack_params(p):
    """Fold / block-diagonalize / cast the natural f32 (in, out) params."""
    f32, bf16 = jnp.float32, jnp.bfloat16
    eye = jnp.eye(G, dtype=f32)

    def bd(w):  # (i, o) -> (G*i, G*o) block-diagonal (4 independent points)
        return jnp.kron(eye, w)

    # Fold feature_linear into the feature-half of the first dir linear
    # (no activation in between).  Fold in f32, cast once to bf16 below.
    dir_wf = p["dir_w0"][:W, :]                # (32, 16)  acts on feature
    dir_wd = p["dir_w0"][W:, :]                # (16, 16)  acts on viewdir
    w_xh = p["feat_w"] @ dir_wf                # (32, 16)
    b_xh = p["feat_b"] @ dir_wf + p["dir_b0"]  # (1, 16)

    # alpha head scattered so group g's rawalpha lands at final output lane 4g+3.
    scatter = jnp.zeros((G, OUT_LANES), f32).at[
        jnp.arange(G), jnp.arange(G) * 4 + 3].set(1.0)               # (4, 16)
    alpha_w_bd = bd(p["alpha_w"]) @ scatter                          # (128, 16)
    alpha_b_bd = jnp.tile(p["alpha_b"], (1, G)) @ scatter            # (1, 16)

    combo_w = jnp.concatenate([bd(w_xh), alpha_w_bd], axis=1)        # (128, 80)
    combo_b = jnp.concatenate([jnp.tile(b_xh, (1, G)), alpha_b_bd], axis=1)

    rgb_w4 = jnp.pad(p["rgb_w"], ((0, 0), (0, 1)))   # (16, 4): zero col -> alpha lane
    rgb_b4 = jnp.pad(p["rgb_b"], ((0, 0), (0, 1)))   # (1, 4)

    return {
        "xyz_w0": bd(p["xyz_w0"]).astype(bf16),
        "xyz_b0": jnp.tile(p["xyz_b0"], (1, G)),
        "xyz_w1": bd(p["xyz_w1"]).astype(bf16),
        "xyz_b1": jnp.tile(p["xyz_b1"], (1, G)),
        "combo_w": combo_w.astype(bf16),
        "combo_b": combo_b,
        "dir_wd": bd(dir_wd).astype(bf16),
        "rgb_w": bd(rgb_w4).astype(bf16),
        "rgb_b": jnp.tile(rgb_b4, (1, G)),
    }


_WEIGHT_NAMES = ["xyz_w0", "xyz_b0", "xyz_w1", "xyz_b1",
                 "combo_w", "combo_b", "dir_wd", "rgb_w", "rgb_b"]


# ------------------------------ forward wrapper --------------------------------
@jax.jit
def nerf_forward(pts, viewdir, packed):
    """pts: (N, INPUT_XYZ_CH) f32, viewdir: (N, INPUT_DIR_CH) f32."""
    N = pts.shape[0]
    n4 = pl.cdiv(N, G) * G
    if n4 != N:  # only when N % 4 != 0 (tiny pad; no bf16 pre-pass anywhere)
        pts = jnp.pad(pts, ((0, n4 - N), (0, 0)))
        viewdir = jnp.pad(viewdir, ((0, n4 - N), (0, 0)))
    rows = n4 // G

    # Free row-major views: 4 points per 128-lane row.
    pts_p = pts.reshape(rows, G * INPUT_XYZ_CH)        # (rows, 128) f32
    dir_p = viewdir.reshape(rows, G * INPUT_DIR_CH)    # (rows, 64)  f32

    tm = _choose_tile_rows(rows)
    grid = (pl.cdiv(rows, tm),)   # ragged tail handled by masked last block

    weight_args = [packed[k] for k in _WEIGHT_NAMES]
    in_specs = [
        pl.BlockSpec((tm, G * INPUT_XYZ_CH), lambda i: (i, 0)),   # pts tile
        pl.BlockSpec((tm, G * INPUT_DIR_CH), lambda i: (i, 0)),   # viewdir tile
    ] + [pl.BlockSpec(w.shape, lambda i: (0, 0)) for w in weight_args]

    out = pl.pallas_call(
        nerf_kernel,
        out_shape=jax.ShapeDtypeStruct((rows, OUT_LANES), jnp.float32),
        grid_spec=pltpu.PrefetchScalarGridSpec(
            num_scalar_prefetch=0,
            grid=grid,
            in_specs=in_specs,
            out_specs=pl.BlockSpec((tm, OUT_LANES), lambda i: (i, 0)),
        ),
        compiler_params=pltpu.CompilerParams(
            dimension_semantics=("parallel",)),
    )(pts_p, dir_p, *weight_args)

    out = out.reshape(n4, 4)[:N]          # free view back to per-point layout
    return {"rgb": out[:, :3], "rawalpha": out[:, 3:4]}


# ------------------------- deterministic init ---------------------------------
def init_params(key):
    """Mimics PyTorch nn.Linear default init (uniform +-1/sqrt(fan_in)) and the
    special uniform init for alpha_linear.  Weights stored as (in, out)."""
    ks = jax.random.split(key, 16)
    ki = iter(range(16))

    def linear(kw, kb, fan_in, fan_out, lo=None, hi=None):
        if lo is None:
            bound = 1.0 / math.sqrt(fan_in)
            lo, hi = -bound, bound
        w = jax.random.uniform(kw, (fan_in, fan_out), jnp.float32, lo, hi)
        b = jax.random.uniform(kb, (1, fan_out), jnp.float32, lo, hi)
        return w, b

    p = {}
    p["xyz_w0"], p["xyz_b0"] = linear(ks[next(ki)], ks[next(ki)], INPUT_XYZ_CH, W)
    p["xyz_w1"], p["xyz_b1"] = linear(ks[next(ki)], ks[next(ki)], W, W)
    p["feat_w"], p["feat_b"] = linear(ks[next(ki)], ks[next(ki)], W, W)
    sqW = math.sqrt(float(W))
    p["alpha_w"], p["alpha_b"] = linear(ks[next(ki)], ks[next(ki)], W, 1,
                                        lo=-0.5 / sqW, hi=1.0 / sqW)
    p["dir_w0"], p["dir_b0"] = linear(ks[next(ki)], ks[next(ki)],
                                      W + INPUT_DIR_CH, W // 2)
    p["rgb_w"], p["rgb_b"] = linear(ks[next(ki)], ks[next(ki)], W // 2, 3)
    return p


# ----------------------------- pure-JAX ref (f32) ------------------------------
def nerf_ref(pts, viewdir, p):
    x = jnp.maximum(pts @ p["xyz_w0"] + p["xyz_b0"], 0.0)
    x = jnp.maximum(x @ p["xyz_w1"] + p["xyz_b1"], 0.0)
    rawalpha = x @ p["alpha_w"] + p["alpha_b"]
    feature = x @ p["feat_w"] + p["feat_b"]
    h = jnp.concatenate([feature, viewdir], axis=-1)
    h = jnp.maximum(h @ p["dir_w0"] + p["dir_b0"], 0.0)
    rgb = jax.nn.sigmoid(h @ p["rgb_w"] + p["rgb_b"])
    return {"rgb": rgb, "rawalpha": rawalpha}


# --------------------------------- main ----------------------------------------
if __name__ == "__main__":
    key = jax.random.PRNGKey(0)
    k_p, k_pts, k_dir = jax.random.split(key, 3)

    params = init_params(k_p)
    packed = pack_params(params)

    N = 200  # e.g. 2 rays x 100 samples, flattened
    pts = jax.random.normal(k_pts, (N, INPUT_XYZ_CH), jnp.float32)
    viewdir = jax.random.normal(k_dir, (N, INPUT_DIR_CH), jnp.float32)

    out = nerf_forward(pts, viewdir, packed)
    jax.block_until_ready(out)

    ref = nerf_ref(pts, viewdir, params)
    assert out["rgb"].shape == (N, 3) and out["rawalpha"].shape == (N, 1)
    # bf16 at the MXU (f32 accumulation, weights folded in f32 then cast once)
    # -> relaxed tolerances vs the f32 reference.
    assert jnp.allclose(out["rgb"], ref["rgb"], atol=3e-2, rtol=3e-2)
    assert jnp.allclose(out["rawalpha"], ref["rawalpha"], atol=3e-2, rtol=3e-2)

    print("KERNEL_OK")
</pallas_src>

<mosaic_0001>
module attributes {stable_mosaic.version = 11 : i64} {
  func.func @nerf_kernel(%arg0: i32, %arg1: memref<50x128xf32, #tpu.memory_space<vmem>>, %arg2: memref<50x64xf32, #tpu.memory_space<vmem>>, %arg3: memref<128x128xbf16, #tpu.memory_space<vmem>>, %arg4: memref<1x128xf32, #tpu.memory_space<vmem>>, %arg5: memref<128x128xbf16, #tpu.memory_space<vmem>>, %arg6: memref<1x128xf32, #tpu.memory_space<vmem>>, %arg7: memref<128x80xbf16, #tpu.memory_space<vmem>>, %arg8: memref<1x80xf32, #tpu.memory_space<vmem>>, %arg9: memref<64x64xbf16, #tpu.memory_space<vmem>>, %arg10: memref<64x16xbf16, #tpu.memory_space<vmem>>, %arg11: memref<1x16xf32, #tpu.memory_space<vmem>>, %arg12: memref<50x16xf32, #tpu.memory_space<vmem>>) attributes {dimension_semantics = [#tpu.dimension_semantics<parallel>], iteration_bounds = array<i64: 1>, scalar_prefetch = 0 : i64, scratch_operands = 0 : i64, tpu.core_type = #tpu.core_type<tc>, window_params = [{transform_indices = @transform_0, window_bounds = array<i64: 50, 128>}, {transform_indices = @transform_1, window_bounds = array<i64: 50, 64>}, {pipeline_mode = #tpu.pipeline_mode<synchronous>, transform_indices = @transform_2, window_bounds = array<i64: 128, 128>}, {pipeline_mode = #tpu.pipeline_mode<synchronous>, transform_indices = @transform_3, window_bounds = array<i64: 1, 128>}, {pipeline_mode = #tpu.pipeline_mode<synchronous>, transform_indices = @transform_4, window_bounds = array<i64: 128, 128>}, {pipeline_mode = #tpu.pipeline_mode<synchronous>, transform_indices = @transform_5, window_bounds = array<i64: 1, 128>}, {pipeline_mode = #tpu.pipeline_mode<synchronous>, transform_indices = @transform_6, window_bounds = array<i64: 128, 80>}, {pipeline_mode = #tpu.pipeline_mode<synchronous>, transform_indices = @transform_7, window_bounds = array<i64: 1, 80>}, {pipeline_mode = #tpu.pipeline_mode<synchronous>, transform_indices = @transform_8, window_bounds = array<i64: 64, 64>}, {pipeline_mode = #tpu.pipeline_mode<synchronous>, transform_indices = @transform_9, window_bounds = array<i64: 64, 16>}, {pipeline_mode = #tpu.pipeline_mode<synchronous>, transform_indices = @transform_10, window_bounds = array<i64: 1, 16>}, {transform_indices = @transform_11, window_bounds = array<i64: 50, 16>}]} {
    %c0 = arith.constant 0 : index
    %c0_0 = arith.constant 0 : index
    %0 = vector.load %arg1[%c0, %c0_0] : memref<50x128xf32, #tpu.memory_space<vmem>>, vector<50x128xf32>
    %1 = arith.truncf %0 : vector<50x128xf32> to vector<50x128xbf16>
    %c0_1 = arith.constant 0 : index
    %c0_2 = arith.constant 0 : index
    %2 = vector.load %arg3[%c0_1, %c0_2] : memref<128x128xbf16, #tpu.memory_space<vmem>>, vector<128x128xbf16>
    %cst = arith.constant dense<0.000000e+00> : vector<50x128xf32>
    %3 = tpu.matmul %1, %2, %cst {dimension_numbers = #tpu.dot_dimension_numbers<[1], [0], [0], [1], [0, 0, 1, 1], [], []>} : vector<50x128xbf16>, vector<128x128xbf16>, vector<50x128xf32> -> vector<50x128xf32>
    %c0_3 = arith.constant 0 : index
    %c0_4 = arith.constant 0 : index
    %4 = vector.load %arg4[%c0_3, %c0_4] : memref<1x128xf32, #tpu.memory_space<vmem>>, vector<1x128xf32>
    %5 = vector.broadcast %4 : vector<1x128xf32> to vector<50x128xf32>
    %6 = arith.addf %3, %5 : vector<50x128xf32>
    %cst_5 = arith.constant 0.000000e+00 : f32
    %7 = vector.broadcast %cst_5 : f32 to vector<50x128xf32>
    %8 = arith.maximumf %6, %7 : vector<50x128xf32>
    %9 = arith.truncf %8 : vector<50x128xf32> to vector<50x128xbf16>
    %c0_6 = arith.constant 0 : index
    %c0_7 = arith.constant 0 : index
    %10 = vector.load %arg5[%c0_6, %c0_7] : memref<128x128xbf16, #tpu.memory_space<vmem>>, vector<128x128xbf16>
    %cst_8 = arith.constant dense<0.000000e+00> : vector<50x128xf32>
    %11 = tpu.matmul %9, %10, %cst_8 {dimension_numbers = #tpu.dot_dimension_numbers<[1], [0], [0], [1], [0, 0, 1, 1], [], []>} : vector<50x128xbf16>, vector<128x128xbf16>, vector<50x128xf32> -> vector<50x128xf32>
    %c0_9 = arith.constant 0 : index
    %c0_10 = arith.constant 0 : index
    %12 = vector.load %arg6[%c0_9, %c0_10] : memref<1x128xf32, #tpu.memory_space<vmem>>, vector<1x128xf32>
    %13 = vector.broadcast %12 : vector<1x128xf32> to vector<50x128xf32>
    %14 = arith.addf %11, %13 : vector<50x128xf32>
    %cst_11 = arith.constant 0.000000e+00 : f32
    %15 = vector.broadcast %cst_11 : f32 to vector<50x128xf32>
    %16 = arith.maximumf %14, %15 : vector<50x128xf32>
    %17 = arith.truncf %16 : vector<50x128xf32> to vector<50x128xbf16>
    %c0_12 = arith.constant 0 : index
    %c0_13 = arith.constant 0 : index
    %18 = vector.load %arg7[%c0_12, %c0_13] : memref<128x80xbf16, #tpu.memory_space<vmem>>, vector<128x80xbf16>
    %cst_14 = arith.constant dense<0.000000e+00> : vector<50x80xf32>
    %19 = tpu.matmul %17, %18, %cst_14 {dimension_numbers = #tpu.dot_dimension_numbers<[1], [0], [0], [1], [0, 0, 1, 1], [], []>} : vector<50x128xbf16>, vector<128x80xbf16>, vector<50x80xf32> -> vector<50x80xf32>
    %c0_15 = arith.constant 0 : index
    %c0_16 = arith.constant 0 : index
    %20 = vector.load %arg8[%c0_15, %c0_16] : memref<1x80xf32, #tpu.memory_space<vmem>>, vector<1x80xf32>
    %21 = vector.broadcast %20 : vector<1x80xf32> to vector<50x80xf32>
    %22 = arith.addf %19, %21 : vector<50x80xf32>
    %23 = vector.extract_strided_slice %22 {offsets = [0, 0], sizes = [50, 64], strides = [1, 1]} : vector<50x80xf32> to vector<50x64xf32>
    %c0_17 = arith.constant 0 : index
    %c0_18 = arith.constant 0 : index
    %24 = vector.load %arg2[%c0_17, %c0_18] : memref<50x64xf32, #tpu.memory_space<vmem>>, vector<50x64xf32>
    %25 = arith.truncf %24 : vector<50x64xf32> to vector<50x64xbf16>
    %c0_19 = arith.constant 0 : index
    %c0_20 = arith.constant 0 : index
    %26 = vector.load %arg9[%c0_19, %c0_20] : memref<64x64xbf16, #tpu.memory_space<vmem>>, vector<64x64xbf16>
    %cst_21 = arith.constant dense<0.000000e+00> : vector<50x64xf32>
    %27 = tpu.matmul %25, %26, %cst_21 {dimension_numbers = #tpu.dot_dimension_numbers<[1], [0], [0], [1], [0, 0, 1, 1], [], []>} : vector<50x64xbf16>, vector<64x64xbf16>, vector<50x64xf32> -> vector<50x64xf32>
    %28 = arith.addf %23, %27 : vector<50x64xf32>
    %cst_22 = arith.constant 0.000000e+00 : f32
    %29 = vector.broadcast %cst_22 : f32 to vector<50x64xf32>
    %30 = arith.maximumf %28, %29 : vector<50x64xf32>
    %31 = arith.truncf %30 : vector<50x64xf32> to vector<50x64xbf16>
    %c0_23 = arith.constant 0 : index
    %c0_24 = arith.constant 0 : index
    %32 = vector.load %arg10[%c0_23, %c0_24] : memref<64x16xbf16, #tpu.memory_space<vmem>>, vector<64x16xbf16>
    %cst_25 = arith.constant dense<0.000000e+00> : vector<50x16xf32>
    %33 = tpu.matmul %31, %32, %cst_25 {dimension_numbers = #tpu.dot_dimension_numbers<[1], [0], [0], [1], [0, 0, 1, 1], [], []>} : vector<50x64xbf16>, vector<64x16xbf16>, vector<50x16xf32> -> vector<50x16xf32>
    %c0_26 = arith.constant 0 : index
    %c0_27 = arith.constant 0 : index
    %34 = vector.load %arg11[%c0_26, %c0_27] : memref<1x16xf32, #tpu.memory_space<vmem>>, vector<1x16xf32>
    %35 = vector.broadcast %34 : vector<1x16xf32> to vector<50x16xf32>
    %36 = arith.addf %33, %35 : vector<50x16xf32>
    %37 = arith.negf %36 : vector<50x16xf32>
    %38 = math.exp %37 : vector<50x16xf32>
    %cst_28 = arith.constant 1.000000e+00 : f32
    %39 = vector.broadcast %cst_28 : f32 to vector<50x16xf32>
    %40 = arith.addf %39, %38 : vector<50x16xf32>
    %41 = arith.divf %39, %40 : vector<50x16xf32>
    %42 = tpu.iota {dimensions = array<i32: 1>} : vector<50x16xi32>
    %c3_i32 = arith.constant 3 : i32
    %43 = vector.broadcast %c3_i32 : i32 to vector<50x16xi32>
    %44 = arith.andi %42, %43 : vector<50x16xi32>
    %c3_i32_29 = arith.constant 3 : i32
    %45 = vector.broadcast %c3_i32_29 : i32 to vector<50x16xi32>
    %46 = arith.cmpi eq, %44, %45 : vector<50x16xi32>
    %47 = vector.extract_strided_slice %22 {offsets = [0, 64], sizes = [50, 16], strides = [1, 1]} : vector<50x80xf32> to vector<50x16xf32>
    %48 = arith.select %46, %47, %41 : vector<50x16xi1>, vector<50x16xf32>
    %c0_30 = arith.constant 0 : index
    %c0_31 = arith.constant 0 : index
    %49 = vector.load %arg12[%c0_30, %c0_31] : memref<50x16xf32, #tpu.memory_space<vmem>>, vector<50x16xf32>
    tpu.vector_store %arg12[%c0_30, %c0_31], %48 {strides = array<i32>} : memref<50x16xf32, #tpu.memory_space<vmem>>, vector<50x16xf32>,
    return
  }
  func.func @transform_0(%arg0: i32) -> (i32, i32) {
    %c0_i32 = arith.constant 0 : i32
    %c0_i32_0 = arith.constant 0 : i32
    return %arg0, %c0_i32 : i32, i32
  }
  func.func @transform_1(%arg0: i32) -> (i32, i32) {
    %c0_i32 = arith.constant 0 : i32
    %c0_i32_0 = arith.constant 0 : i32
    return %arg0, %c0_i32 : i32, i32
  }
  func.func @transform_2(%arg0: i32) -> (i32, i32) {
    %c0_i32 = arith.constant 0 : i32
    %c0_i32_0 = arith.constant 0 : i32
    %c0_i32_1 = arith.constant 0 : i32
    return %c0_i32, %c0_i32_0 : i32, i32
  }
  func.func @transform_3(%arg0: i32) -> (i32, i32) {
    %c0_i32 = arith.constant 0 : i32
    %c0_i32_0 = arith.constant 0 : i32
    %c0_i32_1 = arith.constant 0 : i32
    return %c0_i32, %c0_i32_0 : i32, i32
  }
  func.func @transform_4(%arg0: i32) -> (i32, i32) {
    %c0_i32 = arith.constant 0 : i32
    %c0_i32_0 = arith.constant 0 : i32
    %c0_i32_1 = arith.constant 0 : i32
    return %c0_i32, %c0_i32_0 : i32, i32
  }
  func.func @transform_5(%arg0: i32) -> (i32, i32) {
    %c0_i32 = arith.constant 0 : i32
    %c0_i32_0 = arith.constant 0 : i32
    %c0_i32_1 = arith.constant 0 : i32
    return %c0_i32, %c0_i32_0 : i32, i32
  }
  func.func @transform_6(%arg0: i32) -> (i32, i32) {
    %c0_i32 = arith.constant 0 : i32
    %c0_i32_0 = arith.constant 0 : i32
    %c0_i32_1 = arith.constant 0 : i32
    return %c0_i32, %c0_i32_0 : i32, i32
  }
  func.func @transform_7(%arg0: i32) -> (i32, i32) {
    %c0_i32 = arith.constant 0 : i32
    %c0_i32_0 = arith.constant 0 : i32
    %c0_i32_1 = arith.constant 0 : i32
    return %c0_i32, %c0_i32_0 : i32, i32
  }
  func.func @transform_8(%arg0: i32) -> (i32, i32) {
    %c0_i32 = arith.constant 0 : i32
    %c0_i32_0 = arith.constant 0 : i32
    %c0_i32_1 = arith.constant 0 : i32
    return %c0_i32, %c0_i32_0 : i32, i32
  }
  func.func @transform_9(%arg0: i32) -> (i32, i32) {
    %c0_i32 = arith.constant 0 : i32
    %c0_i32_0 = arith.constant 0 : i32
    %c0_i32_1 = arith.constant 0 : i32
    return %c0_i32, %c0_i32_0 : i32, i32
  }
  func.func @transform_10(%arg0: i32) -> (i32, i32) {
    %c0_i32 = arith.constant 0 : i32
    %c0_i32_0 = arith.constant 0 : i32
    %c0_i32_1 = arith.constant 0 : i32
    return %c0_i32, %c0_i32_0 : i32, i32
  }
  func.func @transform_11(%arg0: i32) -> (i32, i32) {
    %c0_i32 = arith.constant 0 : i32
    %c0_i32_0 = arith.constant 0 : i32
    return %arg0, %c0_i32 : i32, i32
  }
}

</mosaic_0001>

<bundles_post_ra>
// kernel: nerf_forward.1
= control target key start
LH: loop header
LB: loop body
LE: loop exit
PB: predicated region body
PF: predicated region fallthrough
CT: control target
= control target key end

     0   :  { %vm520_vm0 = vcmask 523264   ;;  %s1092_s26 = smov 64   ;;  %vm811_vm2 = vcmask 130048   ;;  %vm818_vm3 = vcmask 123904   ;;  %s1363_s2 = inlined_call_operand.vmem [shape: bf16[128,128], index: 2, kind: input, shape index: {}]   ;;  %s1364_s0 = inlined_call_operand.vmem [shape: f32[50,128], index: 0, kind: input, shape index: {}]   ;;  %s1365_s4 = inlined_call_operand.vmem [shape: bf16[128,128], index: 4, kind: input, shape index: {}]   ;;  %s1366_s6 = inlined_call_operand.vmem [shape: bf16[128,80], index: 6, kind: input, shape index: {}]   ;;  %s1367_s8 = inlined_call_operand.vmem [shape: bf16[64,64], index: 8, kind: input, shape index: {}]   ;;  %s1368_s3 = inlined_call_operand.vmem [shape: f32[1,128], index: 3, kind: input, shape index: {}]   ;;  %s1369_s1 = inlined_call_operand.vmem [shape: f32[50,64], index: 1, kind: input, shape index: {}]   ;;  %s1370_s9 = inlined_call_operand.vmem [shape: bf16[64,16], index: 9, kind: input, shape index: {}]   ;;  %s1371_s5 = inlined_call_operand.vmem [shape: f32[1,128], index: 5, kind: input, shape index: {}]   ;;  %s1372_s7 = inlined_call_operand.vmem [shape: f32[1,80], index: 7, kind: input, shape index: {}]   ;;  %s1373_s10 = inlined_call_operand.vmem [shape: f32[1,16], index: 10, kind: input, shape index: {}]   ;;  %s1374_s11 = inlined_call_operand.vmem [shape: f32[50,16], index: 11, kind: output, shape index: {}]  }
   0x1   :  { %v1032_v0 = vld [vmem:[%s1363_s2] sm:$0xff]   ;;  %v1033_v1 = vld [vmem:[%s1363_s2 + $0x8] sm:$0xff]   ;;  %v1034_v2 = vld [vmem:[%s1363_s2 + $0x10] sm:$0xff]  }
   0x2   :  { %927 = vmatprep.subr.bf16.mxu0 %v1032_v0  ;;  %v1035_v3 = vld [vmem:[%s1363_s2 + $0x18] sm:$0xff]   ;;  %v39_v4 = vld [vmem:[%s1364_s0] sm:$0xff]  ;;  %v40_v5 = vld [vmem:[%s1364_s0 + $0x8] sm:$0xff] }
   0x3   :  { %928 = vmatpush3.bf16.msra.mxu0 %v1032_v0  ;;  %v46_v6 = vpack.c.bf16 %v40_v5, %v39_v4  ;;  %v1036_v7 = vld [vmem:[%s1363_s2 + $0x20] sm:$0xff]   ;;  %v1041_v9 = vld [vmem:[%s1365_s4 + $0x8] sm:$0xff]   ;;  %v1042_v10 = vld [vmem:[%s1365_s4 + $0x10] sm:$0xff]  }
   0x4   :  { %929 = vmatprep.subr.bf16.mxu0 %v1033_v1  ;;  %v1040_v8 = vld [vmem:[%s1365_s4] sm:$0xff]   ;;  %v1037_v11 = vld [vmem:[%s1363_s2 + $0x28] sm:$0xff]   ;;  %v1043_v12 = vld [vmem:[%s1365_s4 + $0x18] sm:$0xff]  }
   0x5   :  { %943 = vmatprep.mubr.bf16.mxu0 %v46_v6  ;;  %951 = vmatprep.subr.bf16.mxu1 %v1040_v8  ;;  %v1038_v13 = vld [vmem:[%s1363_s2 + $0x30] sm:$0xff]   ;;  %v1044_v14 = vld [vmem:[%s1365_s4 + $0x20] sm:$0xff]   ;;  %v1039_v15 = vld [vmem:[%s1363_s2 + $0x38] sm:$0xff]  }
   0x6   :  { %952 = vmatpush3.bf16.msra.mxu1 %v1040_v8  ;;  %v41_v16 = vld [vmem:[%s1364_s0 + $0x10] sm:$0xff]  ;;  %v42_v17 = vld [vmem:[%s1364_s0 + $0x18] sm:$0xff]  ;;  %v1045_v18 = vld [vmem:[%s1365_s4 + $0x28] sm:$0xff]  }
   0x7   :  { %930 = vmatpush3.bf16.msra.mxu0 %v1033_v1  ;;  %953 = vmatprep.subr.bf16.mxu1 %v1041_v9  ;;  %v43_v19 = vld [vmem:[%s1364_s0 + $0x20] sm:$0xff]  ;;  %v44_v20 = vld [vmem:[%s1364_s0 + $0x28] sm:$0xff]  ;;  %v47_v21 = vpack.c.bf16 %v42_v17, %v41_v16  ;;  %v45_v23 = vld [vmem:[%s1364_s0 + $0x30] sm:$0x3] }
   0x8   :  { %931 = vmatprep.subr.bf16.mxu0 %v1034_v2  ;;  %v48_v22 = vpack.c.bf16 %v44_v20, %v43_v19  ;;  %v49_v24 = vpack.c.bf16 %v45_v23, %v45_v23  ;;  %v1046_v25 = vld [vmem:[%s1365_s4 + $0x30] sm:$0xff]   ;;  %v1047_v26 = vld [vmem:[%s1365_s4 + $0x38] sm:$0xff]   ;;  %v1048_v27 = vld [vmem:[%s1366_s6] sm:$0xff]  }
   0x9   :  { %v1049_v28 = vld [vmem:[%s1366_s6 + $0x8] sm:$0xff]   ;;  %v1050_v29 = vld [vmem:[%s1366_s6 + $0x10] sm:$0xff]   ;;  %v1052_v30 = vld [vmem:[%s1367_s8] sm:$0xff]  }
   0xa   :  { %954 = vmatpush3.bf16.msra.mxu1 %v1041_v9  ;;  %v1051_v31 = vld [vmem:[%s1366_s6 + $0x18] sm:$0xff]   ;;  %v1053_v32 = vld [vmem:[%s1366_s6 + $0x20] sm:$0xff]   ;;  %v1055_v33 = vld [vmem:[%s1366_s6 + $0x28] sm:$0xff]  }
   0xb   :  { %932 = vmatpush3.bf16.msra.mxu0 %v1034_v2  ;;  %955 = vmatprep.subr.bf16.mxu1 %v1042_v10  ;;  %v824_v34 = vld [vmem:[%s1368_s3] ss:$0 sm:$0xff]  ;;  %v1054_v52 = vld [vmem:[%s1367_s8 + $0x8] sm:$0xff]   ;;  %v1056_v62 = vld [vmem:[%s1367_s8 + $0x10] sm:$0xff]  }
   0xc   :  { %933 = vmatprep.subr.bf16.mxu0 %v1035_v3  ;;  %v1057_v63 = vld [vmem:[%s1366_s6 + $0x30] sm:$0xff]   ;;  %v1058_v0 = vld [vmem:[%s1367_s8 + $0x18] sm:$0xff]   ;;  %v477_v2 = vld [vmem:[%s1369_s1] sm:$0xff] }
   0xd   :  { %v1059_v1 = vld [vmem:[%s1366_s6 + $0x38] sm:$0xff]   ;;  %v479_v5 = vld [vmem:[%s1369_s1 + $0x10] sm:$0xff]  ;;  %v481_v8 = vld [vmem:[%s1369_s1 + $0x20] sm:$0xff] }
   0xe   :  { %956 = vmatpush3.bf16.msra.mxu1 %v1042_v10  ;;  %v480_v6 = vld [vmem:[%s1369_s1 + $0x18] sm:$0xff]  ;;  %v482_v9 = vld [vmem:[%s1369_s1 + $0x28] sm:$0xff] }
   0xf   :  { %934 = vmatpush3.bf16.msra.mxu0 %v1035_v3  ;;  %957 = vmatprep.subr.bf16.mxu1 %v1043_v12  ;;  %v478_v3 = vld [vmem:[%s1369_s1 + $0x8] sm:$0xff]  ;;  %v486_v10 = vpack.c.bf16 %v482_v9, %v481_v8 }
  0x10   :  { %935 = vmatprep.subr.bf16.mxu0 %v1036_v7  ;;  %v484_v4 = vpack.c.bf16 %v478_v3, %v477_v2 }
  0x12   :  { %958 = vmatpush3.bf16.msra.mxu1 %v1043_v12 }
  0x13   :  { %936 = vmatpush3.bf16.msra.mxu0 %v1036_v7  ;;  %959 = vmatprep.subr.bf16.mxu1 %v1044_v14  ;;  %v485_v7 = vpack.c.bf16 %v480_v6, %v479_v5 }
  0x14   :  { %937 = vmatprep.subr.bf16.mxu0 %v1037_v11 }
  0x16   :  { %960 = vmatpush3.bf16.msra.mxu1 %v1044_v14  ;;  %v833_v14 = vld [vmem:[%s1371_s5] ss:$0 sm:$0xff] }
  0x17   :  { %938 = vmatpush3.bf16.msra.mxu0 %v1037_v11  ;;  %961 = vmatprep.subr.bf16.mxu1 %v1045_v18  ;;  %v483_v11 = vld [vmem:[%s1369_s1 + $0x30] sm:$0x3] }
  0x18   :  { %939 = vmatprep.subr.bf16.mxu0 %v1038_v13  ;;  %v487_v12 = vpack.c.bf16 %v483_v11, %v483_v11 }
  0x1a   :  { %962 = vmatpush3.bf16.msra.mxu1 %v1045_v18 }
  0x1b   :  { %940 = vmatpush3.bf16.msra.mxu0 %v1038_v13  ;;  %963 = vmatprep.subr.bf16.mxu1 %v1046_v25  ;;  %v1060_v13 = vld [vmem:[%s1370_s9] sm:$0xff]  }
  0x1c   :  { %941 = vmatprep.subr.bf16.mxu0 %v1039_v15 }
  0x1e   :  { %964 = vmatpush3.bf16.msra.mxu1 %v1046_v25 }
  0x1f   :  { %942 = vmatpush3.bf16.msra.mxu0 %v1039_v15  ;;  %965 = vmatprep.subr.bf16.mxu1 %v1047_v26 }
  0x20   :  { %975 = vmatprep.subr.bf16.mxu0 %v1048_v27 }
  0x22   :  { %944 = vmatmul.mubr.bf16.vlgmr.msra.gmra.mrb[0].mxu0 %v47_v21  ;;  %966 = vmatpush3.bf16.msra.mxu1 %v1047_v26 }
  0x23   :  { %947 = vmatprep.mubr.bf16.mxu0 %v48_v22  ;;  %976 = vmatpush3.bf16.msra.mxu0 %v1048_v27 }
  0x24   :  { %977 = vmatprep.subr.bf16.mxu0 %v1049_v28  ;;  %999 = vmatprep.subr.bf16.mxu1 %v1052_v30 }
  0x27   :  { %978 = vmatpush3.bf16.msra.mxu0 %v1049_v28 }
  0x28   :  { %979 = vmatprep.subr.bf16.mxu0 %v1050_v29 }
  0x2a   :  { %948 = vmatmul.mubr.bf16.gmra.mrb[4].mxu0 %v49_v24 }
  0x2b   :  { %980 = vmatpush3.bf16.msra.mxu0 %v1050_v29 }
  0x2c   :  { %981 = vmatprep.subr.bf16.mxu0 %v1051_v31 }
  0x2f   :  { %982 = vmatpush3.bf16.msra.mxu0 %v1051_v31 }
  0x30   :  { %983 = vmatprep.subr.bf16.mxu0 %v1053_v32 }
  0x33   :  { %984 = vmatpush3.bf16.msra.mxu0 %v1053_v32 }
  0x34   :  { %985 = vmatprep.subr.bf16.mxu0 %v1055_v33 }
  0x37   :  { %986 = vmatpush3.bf16.msra.mxu0 %v1055_v33 }
  0x38   :  { %987 = vmatprep.subr.bf16.mxu0 %v1057_v63 }
  0x3b   :  { %988 = vmatpush3.bf16.msra.mxu0 %v1057_v63 }
  0x3c   :  { %989 = vmatprep.subr.bf16.mxu0 %v1059_v1 }
  0x3f   :  { %990 = vmatpush3.bf16.msra.mxu0 %v1059_v1 }
  0xf5   :  { %v945_v35 = vpop.f32.mrb[0].mxu0 }
  0xf6   :  { %v164_v36 = vadd.f32 %v945_v35, %v824_v34  ;;  %v155_v37 = vpop.f32.mrb[1].mxu0 }
  0xf7   :  { %v156_v38 = vadd.f32 %v824_v34, %v155_v37  ;;  %v946_v39 = vpop.f32.mrb[2].mxu0 }
  0xf8   :  { %v167_v40 = vadd.f32 %v946_v39, %v824_v34  ;;  %v158_v41 = vpop.f32.mrb[3].mxu0  ;;  %v187_v43 = vmax.f32 %v164_v36, 0.0 }
  0xf9   :  { %v159_v42 = vadd.f32 %v824_v34, %v158_v41  ;;  %v185_v45 = vmax.f32 %v156_v38, 0.0 }
  0xfa   :  { %v188_v44 = vmax.f32 %v167_v40, 0.0 }
  0xfb   :  { %v186_v46 = vmax.f32 %v159_v42, 0.0  ;;  %v1061_v42 = vld [vmem:[%s1370_s9 + $0x8] sm:$0xff]  }
  0xfc   :  { %v193_v47 = vpack.c.bf16 %v188_v44, %v187_v43 }
  0xfd   :  { %v949_v48 = vpop.f32.mrb[4].mxu0  ;;  %v192_v49 = vpack.c.bf16 %v186_v46, %v185_v45  ;;  %v1062_v46 = vld [vmem:[%s1370_s9 + $0x10] sm:$0xff]  }
  0xfe   :  { %v180_v50 = vadd.f32 %v949_v48, %v824_v34  ;;  %v171_v51 = vpop.f32.mrb[5].mxu0  ;;  %v1063_v48 = vld [vmem:[%s1370_s9 + $0x18] sm:$0xff]  }
  0xff   :  { %v172_v53 = vadd.f32 %v824_v34, %v171_v51  ;;  %v950_v54 = vpop.f32.mrb[6].mxu0  ;;  %967 = vmatprep.mubr.bf16.mxu1 %v192_v49 }
 0x100   :  { %v174_v55 = vpop.f32.mrb[7].mxu0  ;;  %968 = vmatmul.mubr.bf16.vlgmr.msra.gmra.mrb[0].mxu1 %v193_v47  ;;  %v191_v57 = vmax.f32 %v180_v50, 0.0 }
 0x101   :  { %v175_v56 = vadd.f32 %v824_v34, %v174_v55  ;;  %1000 = vmatpush3.bf16.msra.mxu1 %v1052_v30  ;;  %v189_v58 = vmax.f32 %v172_v53, 0.0 }
 0x102   :  { %1001 = vmatprep.subr.bf16.mxu1 %v1054_v52  ;;  %v195_v61 = vpack.c.bf16 %v191_v57, %v191_v57 }
 0x103   :  { %v190_v59 = vmax.f32 %v175_v56, 0.0 }
 0x105   :  { %v194_v60 = vpack.c.bf16 %v190_v59, %v189_v58  ;;  %1002 = vmatpush3.bf16.msra.mxu1 %v1054_v52  ;;  %v842_v52 = vld [vmem:[%s1372_s7] ss:$0 sm:$0xff] }
 0x106   :  { %1003 = vmatprep.subr.bf16.mxu1 %v1056_v62 }
 0x107   :  { %971 = vmatprep.mubr.bf16.mxu1 %v194_v60 }
 0x108   :  { %972 = vmatmul.mubr.bf16.gmra.mrb[4].mxu1 %v195_v61 }
 0x109   :  { %1004 = vmatpush3.bf16.msra.mxu1 %v1056_v62  ;;  %1007 = vmatprep.mubr.msk.bf16.mxu1 %vm520_vm0, %v484_v4 }
 0x10a   :  { %1005 = vmatprep.subr.bf16.mxu1 %v1058_v0 }
 0x10d   :  { %1006 = vmatpush3.bf16.msra.mxu1 %v1058_v0 }
 0x10e   :  { %1015 = vmatprep.subr.bf16.mxu1 %v1060_v13 }
 0x110   :  { %1008 = vmatmul.mubr.msk.bf16.vlgmr.msra.gmra.mrb[8].mxu1 %vm520_vm0, %v485_v7 }
 0x111   :  { %1011 = vmatprep.mubr.msk.bf16.mxu1 %vm520_vm0, %v486_v10  ;;  %1016 = vmatpush3.bf16.msra.mxu1 %v1060_v13 }
 0x112   :  { %1017 = vmatprep.subr.bf16.mxu1 %v1061_v42 }
 0x115   :  { %1018 = vmatpush3.bf16.msra.mxu1 %v1061_v42 }
 0x116   :  { %1019 = vmatprep.subr.bf16.mxu1 %v1062_v46 }
 0x118   :  { %1012 = vmatmul.mubr.msk.bf16.gmra.mrb[12].mxu1 %vm520_vm0, %v487_v12 }
 0x119   :  { %1020 = vmatpush3.bf16.msra.mxu1 %v1062_v46 }
 0x11a   :  { %1021 = vmatprep.subr.bf16.mxu1 %v1063_v48 }
 0x11d   :  { %1022 = vmatpush3.bf16.msra.mxu1 %v1063_v48 }
 0x1d3   :  { %v969_v15 = vpop.f32.mrb[0].mxu1 }
 0x1d4   :  { %v310_v16 = vadd.f32 %v969_v15, %v833_v14  ;;  %v301_v17 = vpop.f32.mrb[1].mxu1 }
 0x1d5   :  { %v302_v18 = vadd.f32 %v833_v14, %v301_v17  ;;  %v970_v19 = vpop.f32.mrb[2].mxu1 }
 0x1d6   :  { %v313_v20 = vadd.f32 %v970_v19, %v833_v14  ;;  %v304_v21 = vpop.f32.mrb[3].mxu1  ;;  %v333_v23 = vmax.f32 %v310_v16, 0.0 }
 0x1d7   :  { %v305_v22 = vadd.f32 %v833_v14, %v304_v21  ;;  %v331_v25 = vmax.f32 %v302_v18, 0.0 }
 0x1d8   :  { %v334_v24 = vmax.f32 %v313_v20, 0.0 }
 0x1d9   :  { %v332_v26 = vmax.f32 %v305_v22, 0.0  ;;  %v859_v22 = vld [vmem:[%s1373_s10] ss:$0 sm:$0xff] }
 0x1da   :  { %v339_v27 = vpack.c.bf16 %v334_v24, %v333_v23 }
 0x1db   :  { %v338_v28 = vpack.c.bf16 %v332_v26, %v331_v25  ;;  %v973_v29 = vpop.f32.mrb[4].mxu1 }
 0x1dc   :  { %v326_v30 = vadd.f32 %v973_v29, %v833_v14  ;;  %v317_v31 = vpop.f32.mrb[5].mxu1 }
 0x1dd   :  { %v318_v32 = vadd.f32 %v833_v14, %v317_v31  ;;  %v974_v33 = vpop.f32.mrb[6].mxu1  ;;  %991 = vmatprep.mubr.bf16.mxu0 %v338_v28 }
 0x1de   :  { %v320_v34 = vpop.f32.mrb[7].mxu1  ;;  %992 = vmatmul.mubr.bf16.vlgmr.msra.gmra.mrb[8].mxu0 %v339_v27  ;;  %v337_v36 = vmax.f32 %v326_v30, 0.0 }
 0x1df   :  { %v321_v35 = vadd.f32 %v833_v14, %v320_v34  ;;  %v335_v37 = vmax.f32 %v318_v32, 0.0 }
 0x1e0   :  { %v341_v40 = vpack.c.bf16 %v337_v36, %v337_v36 }
 0x1e1   :  { %v336_v38 = vmax.f32 %v321_v35, 0.0 }
 0x1e3   :  { %v340_v39 = vpack.c.bf16 %v336_v38, %v335_v37  ;;  %v1009_v41 = vpop.f32.mrb[8].mxu1 }
 0x1e4   :  { %v567_v43 = vpop.f32.mrb[9].mxu1 }
 0x1e5   :  { %995 = vmatprep.mubr.bf16.mxu0 %v340_v39  ;;  %v1010_v44 = vpop.f32.mrb[10].mxu1 }
 0x1e6   :  { %996 = vmatmul.mubr.bf16.gmra.mrb[12].mxu0 %v341_v40  ;;  %v570_v45 = vpop.f32.mrb[11].mxu1 }
 0x1eb   :  { %v1013_v47 = vpop.f32.mrb[12].mxu1 }
 0x1ec   :  { %v583_v49 = vpop.f32.mrb[13].mxu1 }
 0x1ed   :  { %v1014_v50 = vpop.f32.mrb[14].mxu1 }
 0x1ee   :  { %v586_v51 = vpop.f32.mrb[15].mxu1 }
 0x2b1   :  { %v993_v53 = vpop.f32.mrb[8].mxu0 }
 0x2b2   :  { %v456_v54 = vadd.f32 %v993_v53, %v842_v52  ;;  %v447_v55 = vpop.f32.mrb[9].mxu0 }
 0x2b3   :  { %v448_v56 = vadd.f32 %v842_v52, %v447_v55  ;;  %v994_v57 = vpop.f32.mrb[10].mxu0 }
 0x2b4   :  { %v599_v58 = vadd.f32 %v1009_v41, %v456_v54  ;;  %v459_v59 = vadd.f32 %v994_v57, %v842_v52  ;;  %787 = vrot.lane.b32.xlu1 %v456_v54, %s1092_s26  ;;  %v450_v60 = vpop.f32.mrb[11].mxu0 }
 0x2b5   :  { %v597_v61 = vadd.f32 %v567_v43, %v448_v56  ;;  %v451_v62 = vadd.f32 %v842_v52, %v450_v60  ;;  %783 = vrot.lane.b32.xlu0 %v448_v56, %s1092_s26 }
 0x2b6   :  { %v600_v63 = vadd.f32 %v1010_v44, %v459_v59  ;;  %v606_v1 = vmax.f32 %v599_v58, 0.0  ;;  %v772_v44 = vlaneseq }
 0x2b7   :  { %v598_v0 = vadd.f32 %v570_v45, %v451_v62  ;;  %v604_v3 = vmax.f32 %v597_v61, 0.0 }
 0x2b8   :  { %v607_v2 = vmax.f32 %v600_v63, 0.0  ;;  %789 = vrot.lane.b32.xlu1 %v459_v59, %s1092_s26  ;;  %v773_v53 = vand.u32 127, %v772_v44 }
 0x2b9   :  { %v605_v4 = vmax.f32 %v598_v0, 0.0  ;;  %v997_v5 = vpop.f32.mrb[12].mxu0  ;;  %785 = vrot.lane.b32.xlu0 %v451_v62, %s1092_s26 }
 0x2ba   :  { %v612_v6 = vpack.c.bf16 %v607_v2, %v606_v1  ;;  %v472_v7 = vadd.f32 %v997_v5, %v842_v52  ;;  %v463_v8 = vpop.f32.mrb[13].mxu0  ;;  %v774_v56 = vand.u32 3, %v773_v53 }
 0x2bb   :  { %v611_v9 = vpack.c.bf16 %v605_v4, %v604_v3  ;;  %v464_v10 = vadd.f32 %v842_v52, %v463_v8  ;;  %v998_v11 = vpop.f32.mrb[14].mxu0 }
 0x2bc   :  { %v603_v12 = vadd.f32 %v1013_v47, %v472_v7  ;;  %v466_v13 = vpop.f32.mrb[15].mxu0  ;;  %vm1318_vm1 = vcmp.eq.s32.totalorder %v774_v56, 3 }
 0x2bd   :  { %v601_v14 = vadd.f32 %v583_v49, %v464_v10  ;;  %v467_v15 = vadd.f32 %v842_v52, %v466_v13  ;;  %791 = vrot.lane.b32.xlu0 %v464_v10, %s1092_s26  ;;  %1023 = vmatprep.mubr.msk.bf16.mxu1 %vm520_vm0, %v611_v9 }
 0x2be   :  { %1024 = vmatmul.mubr.msk.bf16.vlgmr.msra.gmra.mrb[16].mxu1 %vm520_vm0, %v612_v6  ;;  %v610_v17 = vmax.f32 %v603_v12, 0.0 }
 0x2bf   :  { %v602_v16 = vadd.f32 %v586_v51, %v467_v15  ;;  %793 = vrot.lane.b32.xlu1 %v467_v15, %s1092_s26  ;;  %v608_v18 = vmax.f32 %v601_v14, 0.0 }
 0x2c0   :  { %v614_v21 = vpack.c.bf16 %v610_v17, %v610_v17 }
 0x2c1   :  { %v609_v19 = vmax.f32 %v602_v16, 0.0  ;;  %795 = vrot.lane.b32.xlu0 %v472_v7, %s1092_s26 }
 0x2c3   :  { %v613_v20 = vpack.c.bf16 %v609_v19, %v608_v18 }
 0x2c5   :  { %1027 = vmatprep.mubr.msk.bf16.mxu1 %vm520_vm0, %v613_v20 }
 0x2c6   :  { %1028 = vmatmul.mubr.msk.bf16.gmra.mrb[20].mxu1 %vm520_vm0, %v614_v21 }
 0x326   :  { %v788_v59 = vpop.permute.xlu1 %787 }
 0x327   :  { %v784_v52 = vpop.permute.xlu0 %783 }
 0x32a   :  { %v790_v6 = vpop.permute.xlu1 %789 }
 0x32b   :  { %v786_v60 = vpop.permute.xlu0 %785 }
 0x32f   :  { %v792_v7 = vpop.permute.xlu0 %791 }
 0x331   :  { %v794_v18 = vpop.permute.xlu1 %793 }
 0x333   :  { %v796_v13 = vpop.permute.xlu0 %795 }
 0x391   :  { %v1025_v23 = vpop.f32.mrb[16].mxu1 }
 0x392   :  { %v709_v24 = vadd.f32 %v1025_v23, %v859_v22  ;;  %v700_v25 = vpop.f32.mrb[17].mxu1 }
 0x393   :  { %v701_v26 = vadd.f32 %v859_v22, %v700_v25  ;;  %v1026_v27 = vpop.f32.mrb[18].mxu1 }
 0x394   :  { %v870_v28 = vmul.f32 -1.442695, %v709_v24  ;;  %v712_v29 = vadd.f32 %v1026_v27, %v859_v22  ;;  %v703_v30 = vpop.f32.mrb[19].mxu1 }
 0x395   :  { %v868_v31 = vmul.f32 -1.442695, %v701_v26  ;;  %v704_v32 = vadd.f32 %v859_v22, %v703_v30 }
 0x396   :  { %1064 = vpow2.f32 %v870_v28  ;;  %v871_v33 = vmul.f32 -1.442695, %v712_v29 }
 0x397   :  { %1066 = vpow2.f32 %v868_v31  ;;  %v869_v34 = vmul.f32 -1.442695, %v704_v32 }
 0x398   :  { %1068 = vpow2.f32 %v871_v33 }
 0x399   :  { %1070 = vpow2.f32 %v869_v34  ;;  %v1029_v35 = vpop.f32.mrb[20].mxu1 }
 0x39a   :  { %v725_v36 = vadd.f32 %v1029_v35, %v859_v22  ;;  %v716_v37 = vpop.f32.mrb[21].mxu1 }
 0x39b   :  { %v717_v38 = vadd.f32 %v859_v22, %v716_v37  ;;  %v1030_v39 = vpop.f32.mrb[22].mxu1 }
 0x39c   :  { %v874_v40 = vmul.f32 -1.442695, %v725_v36  ;;  %v719_v41 = vpop.f32.mrb[23].mxu1 }
 0x39d   :  { %v872_v42 = vmul.f32 -1.442695, %v717_v38  ;;  %v720_v43 = vadd.f32 %v859_v22, %v719_v41 }
 0x39e   :  { %1072 = vpow2.f32 %v874_v40 }
 0x39f   :  { %1074 = vpow2.f32 %v872_v42  ;;  %v873_v45 = vmul.f32 -1.442695, %v720_v43 }
 0x3a0   :  { %v1065_v46 = vpop.eup %1064 }
 0x3a1   :  { %v1067_v47 = vpop.eup %1066  ;;  %v753_v48 = vadd.f32 1.0, %v1065_v46  ;;  %1076 = vpow2.f32 %v873_v45 }
 0x3a2   :  { %v1069_v49 = vpop.eup %1068  ;;  %v751_v50 = vadd.f32 1.0, %v1067_v47 }
 0x3a3   :  { %v1071_v51 = vpop.eup %1070  ;;  %1078 = vrcp.f32 %v753_v48  ;;  %v754_v54 = vadd.f32 1.0, %v1069_v49 }
 0x3a4   :  { %1080 = vrcp.f32 %v751_v50  ;;  %v752_v55 = vadd.f32 1.0, %v1071_v51 }
 0x3a5   :  { %1082 = vrcp.f32 %v754_v54 }
 0x3a6   :  { %1084 = vrcp.f32 %v752_v55 }
 0x3a8   :  { %v1073_v57 = vpop.eup %1072 }
 0x3a9   :  { %v1075_v58 = vpop.eup %1074  ;;  %v757_v61 = vadd.f32 1.0, %v1073_v57 }
 0x3aa   :  { %v755_v62 = vadd.f32 1.0, %v1075_v58 }
 0x3ab   :  { %v1077_v63 = vpop.eup %1076  ;;  %1086 = vrcp.f32 %v757_v61 }
 0x3ac   :  { %1088 = vrcp.f32 %v755_v62  ;;  %v756_v1 = vadd.f32 1.0, %v1077_v63 }
 0x3ad   :  { %v1079_v2 = vpop.eup %1078 }
 0x3ae   :  { %v1081_v3 = vpop.eup %1080  ;;  %v806_v4 = vsel %vm1318_vm1, %v788_v59, %v1079_v2  ;;  %1090 = vrcp.f32 %v756_v1 }
 0x3af   :  { %v1083_v5 = vpop.eup %1082  ;;  %814 = vst.msk [vmem:[%s1374_s11 + $0x10] sm:$0xff] %vm811_vm2, %v806_v4  ;;  %v804_v8 = vsel %vm1318_vm1, %v784_v52, %v1081_v3 }
 0x3b0   :  { %v1085_v9 = vpop.eup %1084  ;;  %812 = vst.msk [vmem:[%s1374_s11] sm:$0xff] %vm811_vm2, %v804_v8  ;;  %v807_v10 = vsel %vm1318_vm1, %v790_v6, %v1083_v5 }
 0x3b1   :  { %815 = vst.msk [vmem:[%s1374_s11 + $0x18] sm:$0xff] %vm811_vm2, %v807_v10  ;;  %v805_v11 = vsel %vm1318_vm1, %v786_v60, %v1085_v9 }
 0x3b2   :  { %813 = vst.msk [vmem:[%s1374_s11 + $0x8] sm:$0xff] %vm811_vm2, %v805_v11 }
 0x3b5   :  { %v1087_v12 = vpop.eup %1086 }
 0x3b6   :  { %v1089_v14 = vpop.eup %1088  ;;  %v810_v15 = vsel %vm1318_vm1, %v796_v13, %v1087_v12 }
 0x3b7   :  { %819 = vst.msk [vmem:[%s1374_s11 + $0x30] sm:$0x3] %vm818_vm3, %v810_v15  ;;  %v808_v16 = vsel %vm1318_vm1, %v792_v7, %v1089_v14 }
 0x3b8   :  { %v1091_v17 = vpop.eup %1090  ;;  %816 = vst.msk [vmem:[%s1374_s11 + $0x20] sm:$0xff] %vm811_vm2, %v808_v16 }
 0x3b9   :  { %v809_v19 = vsel %vm1318_vm1, %v794_v18, %v1091_v17 }
 0x3ba   :  { %817 = vst.msk [vmem:[%s1374_s11 + $0x28] sm:$0xff] %vm811_vm2, %v809_v19 }

</bundles_post_ra>
